<compile_context>
chip_gen: v7x
topology: tpu7x:2x2x1
jax: 0.10.0
libtpu: 0.0.40
codegen_flags: <defaults>
</compile_context>

<pallas_src>
import jax
import jax.numpy as jnp
from jax import lax
from jax.experimental import pallas as pl
from jax.experimental.pallas import tpu as pltpu


def mlp_softmax_kernel(xt_ref, w1t_ref, b1t_ref, w2t_ref, b2t_ref, ot_ref):
    # fc1 on the MXU: (hidden, in) @ (in, TB) -> (hidden, TB), f32 accumulate.
    ht = jnp.dot(
        w1t_ref[...], xt_ref[...],
        preferred_element_type=jnp.float32,
        precision=lax.Precision.HIGHEST,
    )
    ht = jnp.maximum(ht + b1t_ref[...], 0.0)            # (hidden, TB) + (hidden, 1)

    # fc2 off the MXU: K = hidden = 2, so two VPU broadcast FMAs instead of a
    # ~1%-utilized MXU dot + serialized result pops.  Lane-dense: column == sample.
    hidden = w2t_ref.shape[1]
    logits = b2t_ref[...]                                # (out, 1) -> broadcasts up
    for j in range(hidden):                              # unrolled at trace time (hidden=2)
        logits = logits + w2t_ref[:, j:j + 1] * ht[j:j + 1, :]   # (out,1) * (1,TB)

    # Numerically-stable softmax over the feature (sublane) axis == torch dim=1.
    m = jnp.max(logits, axis=0, keepdims=True)           # (1, TB)
    e = jnp.exp(logits - m)
    denom = jnp.sum(e, axis=0, keepdims=True)            # (1, TB)
    ot_ref[...] = (e / denom).astype(ot_ref.dtype)       # exact divide (correctness)


def torch_mlp_forward(x, w1, b1, w2, b2, *, tb=4096):
    """x: (B, input_size) f32 -> (B, output_size) f32 softmax probabilities.

    tb: batch tile (samples per grid step).  Samples live on the lane axis inside
    the kernel, so tb must be a multiple of 128 when B > tb.  Sweepable up to
    ~16384 within every generation's scoped-VMEM limit (working set ~0.4 MiB per
    1024 samples, double-buffered).
    """
    B, in_size = x.shape
    hidden = w1.shape[1]
    out_size = w2.shape[1]

    # Layout plumbing: put the batch on the lane axis (lane-dense loads/compute/stores).
    xt = x.T                                   # (in, B)
    w1t = w1.T                                 # (hidden, in)
    w2t = w2.T                                 # (out, hidden)
    b1t = b1.reshape(hidden, 1)
    b2t = b2.reshape(out_size, 1)

    if B <= tb:
        TB = B                                 # single full-extent tile
    else:
        if tb % 128 != 0:
            raise ValueError("tb must be a multiple of 128 when tiling the batch")
        TB = tb
    grid = (pl.cdiv(B, TB),)                   # ragged last tile; no pad / slice HBM passes

    out_t = pl.pallas_call(
        mlp_softmax_kernel,
        out_shape=jax.ShapeDtypeStruct((out_size, B), jnp.float32),
        grid=grid,
        in_specs=[
            pl.BlockSpec((in_size, TB), lambda i: (0, i)),       # batch-tiled x^T
            pl.BlockSpec((hidden, in_size), lambda i: (0, 0)),   # VMEM-resident params
            pl.BlockSpec((hidden, 1), lambda i: (0, 0)),
            pl.BlockSpec((out_size, hidden), lambda i: (0, 0)),
            pl.BlockSpec((out_size, 1), lambda i: (0, 0)),
        ],
        out_specs=pl.BlockSpec((out_size, TB), lambda i: (0, i)),
        compiler_params=pltpu.CompilerParams(
            dimension_semantics=("parallel",),         # megacore sharding on v7x
            vmem_limit_bytes=32 * 1024 * 1024,         # explicit; ~1.6 MiB used at tb=4096
        ),
    )(xt, w1t, b1t, w2t, b2t)

    return out_t.T                              # back to torch layout (B, out)


def _reference(x, w1, b1, w2, b2):
    h = jnp.maximum(jnp.dot(x, w1, precision=lax.Precision.HIGHEST) + b1, 0.0)
    logits = jnp.dot(h, w2, precision=lax.Precision.HIGHEST) + b2
    return jax.nn.softmax(logits, axis=1)


if __name__ == "__main__":
    # Small shapes consistent with the module: batch=8, input_size=32, hidden=2, output_size=16
    batch, input_size, hidden, output_size = 8, 32, 2, 16

    key = jax.random.PRNGKey(0)
    kx, k1, kb1, k2, kb2 = jax.random.split(key, 5)

    x = jax.random.normal(kx, (batch, input_size), dtype=jnp.float32)

    # Deterministic parameter init (uniform like torch's default Linear init bounds).
    bound1 = 1.0 / (input_size ** 0.5)
    w1 = jax.random.uniform(k1, (input_size, hidden), jnp.float32, -bound1, bound1)
    b1 = jax.random.uniform(kb1, (hidden,), jnp.float32, -bound1, bound1)
    bound2 = 1.0 / (hidden ** 0.5)
    w2 = jax.random.uniform(k2, (hidden, output_size), jnp.float32, -bound2, bound2)
    b2 = jax.random.uniform(kb2, (output_size,), jnp.float32, -bound2, bound2)

    # 1) Single-tile path (B <= tb).
    out = torch_mlp_forward(x, w1, b1, w2, b2)
    jax.block_until_ready(out)
    ref = _reference(x, w1, b1, w2, b2)
    assert out.shape == (batch, output_size)
    assert jnp.allclose(out, ref, atol=1e-4, rtol=1e-4), "mismatch vs reference (single tile)"
    assert jnp.allclose(jnp.sum(out, axis=1), 1.0, atol=1e-5), "softmax rows do not sum to 1"

    # 2) Multi-tile path with a ragged last tile (B not a multiple of tb).
    batch2 = 300
    x2 = jax.random.normal(jax.random.PRNGKey(1), (batch2, input_size), dtype=jnp.float32)
    out2 = torch_mlp_forward(x2, w1, b1, w2, b2, tb=128)
    jax.block_until_ready(out2)
    ref2 = _reference(x2, w1, b1, w2, b2)
    assert out2.shape == (batch2, output_size)
    assert jnp.allclose(out2, ref2, atol=1e-4, rtol=1e-4), "mismatch vs reference (tiled/ragged)"

    print("KERNEL_OK")
</pallas_src>

<mosaic_0001>
module attributes {stable_mosaic.version = 11 : i64} {
  func.func @mlp_softmax_kernel(%arg0: i32, %arg1: memref<32x8xf32, #tpu.memory_space<vmem>>, %arg2: memref<2x32xf32, #tpu.memory_space<vmem>>, %arg3: memref<2x1xf32, #tpu.memory_space<vmem>>, %arg4: memref<16x2xf32, #tpu.memory_space<vmem>>, %arg5: memref<16x1xf32, #tpu.memory_space<vmem>>, %arg6: memref<16x8xf32, #tpu.memory_space<vmem>>) attributes {dimension_semantics = [#tpu.dimension_semantics<parallel>], iteration_bounds = array<i64: 1>, scalar_prefetch = 0 : i64, scratch_operands = 0 : i64, tpu.core_type = #tpu.core_type<tc>, window_params = [{transform_indices = @transform_0, window_bounds = array<i64: 32, 8>}, {pipeline_mode = #tpu.pipeline_mode<synchronous>, transform_indices = @transform_1, window_bounds = array<i64: 2, 32>}, {pipeline_mode = #tpu.pipeline_mode<synchronous>, transform_indices = @transform_2, window_bounds = array<i64: 2, 1>}, {pipeline_mode = #tpu.pipeline_mode<synchronous>, transform_indices = @transform_3, window_bounds = array<i64: 16, 2>}, {pipeline_mode = #tpu.pipeline_mode<synchronous>, transform_indices = @transform_4, window_bounds = array<i64: 16, 1>}, {transform_indices = @transform_5, window_bounds = array<i64: 16, 8>}]} {
    %c0 = arith.constant 0 : index
    %c0_0 = arith.constant 0 : index
    %0 = vector.load %arg2[%c0, %c0_0] : memref<2x32xf32, #tpu.memory_space<vmem>>, vector<2x32xf32>
    %c0_1 = arith.constant 0 : index
    %c0_2 = arith.constant 0 : index
    %1 = vector.load %arg1[%c0_1, %c0_2] : memref<32x8xf32, #tpu.memory_space<vmem>>, vector<32x8xf32>
    %cst = arith.constant dense<0.000000e+00> : vector<2x8xf32>
    %2 = tpu.matmul %0, %1, %cst {dimension_numbers = #tpu.dot_dimension_numbers<[1], [0], [0], [1], [0, 0, 1, 1], [], []>, precision = #tpu.contract_precision<fp32>} : vector<2x32xf32>, vector<32x8xf32>, vector<2x8xf32> -> vector<2x8xf32>
    %c0_3 = arith.constant 0 : index
    %c0_4 = arith.constant 0 : index
    %3 = vector.load %arg3[%c0_3, %c0_4] : memref<2x1xf32, #tpu.memory_space<vmem>>, vector<2x1xf32>
    %4 = vector.broadcast %3 : vector<2x1xf32> to vector<2x8xf32>
    %5 = arith.addf %2, %4 : vector<2x8xf32>
    %cst_5 = arith.constant 0.000000e+00 : f32
    %6 = vector.broadcast %cst_5 : f32 to vector<2x8xf32>
    %7 = arith.maximumf %5, %6 : vector<2x8xf32>
    %c0_6 = arith.constant 0 : index
    %c0_7 = arith.constant 0 : index
    %8 = vector.load %arg5[%c0_6, %c0_7] : memref<16x1xf32, #tpu.memory_space<vmem>>, vector<16x1xf32>
    %c0_8 = arith.constant 0 : index
    %c0_9 = arith.constant 0 : index
    %9 = vector.load %arg4[%c0_8, %c0_9] : memref<16x2xf32, #tpu.memory_space<vmem>>, vector<16x1xf32>
    %10 = vector.extract_strided_slice %7 {offsets = [0, 0], sizes = [1, 8], strides = [1, 1]} : vector<2x8xf32> to vector<1x8xf32>
    %11 = vector.broadcast %9 : vector<16x1xf32> to vector<16x8xf32>
    %12 = vector.broadcast %10 : vector<1x8xf32> to vector<16x8xf32>
    %13 = arith.mulf %11, %12 : vector<16x8xf32>
    %14 = vector.broadcast %8 : vector<16x1xf32> to vector<16x8xf32>
    %15 = arith.addf %14, %13 : vector<16x8xf32>
    %c0_10 = arith.constant 0 : index
    %c1 = arith.constant 1 : index
    %16 = vector.load %arg4[%c0_10, %c1] : memref<16x2xf32, #tpu.memory_space<vmem>>, vector<16x1xf32>
    %17 = vector.extract_strided_slice %7 {offsets = [1, 0], sizes = [1, 8], strides = [1, 1]} : vector<2x8xf32> to vector<1x8xf32>
    %18 = vector.broadcast %16 : vector<16x1xf32> to vector<16x8xf32>
    %19 = vector.broadcast %17 : vector<1x8xf32> to vector<16x8xf32>
    %20 = arith.mulf %18, %19 : vector<16x8xf32>
    %21 = arith.addf %15, %20 : vector<16x8xf32>
    %cst_11 = arith.constant dense<0xFF800000> : vector<8xf32>
    %22 = vector.multi_reduction <maximumf>, %21, %cst_11 [0] : vector<16x8xf32> to vector<8xf32>
    %23 = vector.shape_cast %22 : vector<8xf32> to vector<1x8xf32>
    %24 = vector.broadcast %23 : vector<1x8xf32> to vector<16x8xf32>
    %25 = arith.subf %21, %24 : vector<16x8xf32>
    %26 = math.exp %25 : vector<16x8xf32>
    %cst_12 = arith.constant dense<0.000000e+00> : vector<8xf32>
    %27 = vector.multi_reduction <add>, %26, %cst_12 [0] : vector<16x8xf32> to vector<8xf32>
    %28 = vector.shape_cast %27 : vector<8xf32> to vector<1x8xf32>
    %29 = vector.broadcast %28 : vector<1x8xf32> to vector<16x8xf32>
    %30 = arith.divf %26, %29 : vector<16x8xf32>
    %c0_13 = arith.constant 0 : index
    %c0_14 = arith.constant 0 : index
    %31 = vector.load %arg6[%c0_13, %c0_14] : memref<16x8xf32, #tpu.memory_space<vmem>>, vector<16x8xf32>
    tpu.vector_store %arg6[%c0_13, %c0_14], %30 {strides = array<i32>} : memref<16x8xf32, #tpu.memory_space<vmem>>, vector<16x8xf32>,
    return
  }
  func.func @transform_0(%arg0: i32) -> (i32, i32) {
    %c0_i32 = arith.constant 0 : i32
    %c0_i32_0 = arith.constant 0 : i32
    return %c0_i32, %arg0 : i32, i32
  }
  func.func @transform_1(%arg0: i32) -> (i32, i32) {
    %c0_i32 = arith.constant 0 : i32
    %c0_i32_0 = arith.constant 0 : i32
    %c0_i32_1 = arith.constant 0 : i32
    return %c0_i32, %c0_i32_0 : i32, i32
  }
  func.func @transform_2(%arg0: i32) -> (i32, i32) {
    %c0_i32 = arith.constant 0 : i32
    %c0_i32_0 = arith.constant 0 : i32
    %c0_i32_1 = arith.constant 0 : i32
    return %c0_i32, %c0_i32_0 : i32, i32
  }
  func.func @transform_3(%arg0: i32) -> (i32, i32) {
    %c0_i32 = arith.constant 0 : i32
    %c0_i32_0 = arith.constant 0 : i32
    %c0_i32_1 = arith.constant 0 : i32
    return %c0_i32, %c0_i32_0 : i32, i32
  }
  func.func @transform_4(%arg0: i32) -> (i32, i32) {
    %c0_i32 = arith.constant 0 : i32
    %c0_i32_0 = arith.constant 0 : i32
    %c0_i32_1 = arith.constant 0 : i32
    return %c0_i32, %c0_i32_0 : i32, i32
  }
  func.func @transform_5(%arg0: i32) -> (i32, i32) {
    %c0_i32 = arith.constant 0 : i32
    %c0_i32_0 = arith.constant 0 : i32
    return %c0_i32, %arg0 : i32, i32
  }
}

</mosaic_0001>

<bundles_post_ra>
// kernel: tpu_custom_call.1
= control target key start
LH: loop header
LB: loop body
LE: loop exit
PB: predicated region body
PF: predicated region fallthrough
CT: control target
= control target key end

     0   :  { %vm31_vm0 = vcmask 261120   ;;  %v760_v0 = vmov 0.0|0.0   ;;  %vm761_vm1 = vmmov 0   ;;  %v762_v8 = vmov 0.0   ;;  %s888_s0 = inlined_call_operand.vmem [shape: f32[32,8], index: 0, kind: input, shape index: {}]   ;;  %s889_s1 = inlined_call_operand.vmem [shape: f32[2,32], index: 1, kind: input, shape index: {}]   ;;  %s890_s2 = inlined_call_operand.vmem [shape: f32[2,1], index: 2, kind: input, shape index: {}]   ;;  %s891_s3 = inlined_call_operand.vmem [shape: f32[16,2], index: 3, kind: input, shape index: {}]   ;;  %s892_s4 = inlined_call_operand.vmem [shape: f32[16,1], index: 4, kind: input, shape index: {}]   ;;  %s893_s5 = inlined_call_operand.vmem [shape: f32[16,8], index: 5, kind: output, shape index: {}]  }
   0x1   :  { %699 = vmatprep.subr.bf16.mxu1 %v760_v0  ;;  %717 = vmatprep.subr.bf16.mxu0 %v760_v0  ;;  %v21_v1 = vld [vmem:[%s888_s0] sm:$0xff]  ;;  %v22_v2 = vld [vmem:[%s888_s0 + $0x8] sm:$0xff]  ;;  %v23_v3 = vld [vmem:[%s888_s0 + $0x10] sm:$0xff]  ;;  %v763_v12 = vmov 0   ;;  %v764_v43 = vmov 1   ;;  %v535_v49 = vlaneseq  ;;  %vm569_vm2 = vcmask 64512  }
   0x2   :  { %v36_v4 = vand.u32 4294901760, %v21_v1  ;;  %v39_v5 = vand.u32 4294901760, %v22_v2  ;;  %v24_v6 = vld [vmem:[%s888_s0 + $0x18] sm:$0xff]  ;;  %v42_v7 = vand.u32 4294901760, %v23_v3  ;;  %641 = vmatprep.mubr.msk.f32.mxu1 %vm761_vm1, %v762_v8  ;;  %674 = vmatprep.mubr.msk.f32.mxu0 %vm761_vm1, %v762_v8  ;;  %v20_v9 = vld [vmem:[%s889_s1] sm:$0x3] }
   0x3   :  { %v45_v10 = vand.u32 4294901760, %v24_v6  ;;  %v33_v11 = vsel %vm31_vm0, %v20_v9, 0  ;;  %750 = vset.pattern.permute.xlu0 %v763_v12  ;;  %v25_v13 = vld [vmem:[%s890_s2] sm:$0x3]  ;;  %751 = vset.pattern.permute.xlu1 %v763_v12  ;;  %v524_v14 = vld [vmem:[%s891_s3 + $0x8] sm:$0xff]  ;;  %v536_v53 = vshrl.u32 %v535_v49, 7 }
   0x4   :  { %v700_v15 = vpack.c.bf16 %v39_v5, %v36_v4  ;;  %v823_v16 = vsub.f32 %v21_v1, %v36_v4  ;;  %v825_v17 = vsub.f32 %v22_v2, %v39_v5  ;;  %v827_v18 = vsub.f32 %v23_v3, %v42_v7  ;;  %28 = vperm.xlu0 %750, %v25_v13   ;;  %v523_v21 = vld [vmem:[%s891_s3] sm:$0xff]  ;;  %v522_v34 = vld [vmem:[%s892_s4 + $0x8] sm:$0xff] }
   0x5   :  { %v829_v19 = vsub.f32 %v24_v6, %v45_v10  ;;  %v831_v20 = vand.u32 4294901760, %v33_v11  ;;  %532 = vperm.xlu1 %751, %v524_v14   ;;  %v703_v22 = vpack.c.bf16 %v45_v10, %v42_v7  ;;  %v521_v26 = vld [vmem:[%s892_s4] sm:$0xff]  ;;  %v537_v59 = vsub.s32 0, %v536_v53 }
   0x6   :  { %701 = vmatpush3.bf16.msra.mxu1 %v700_v15  ;;  %719 = vmatpush3.bf16.msra.mxu0 %v700_v15  ;;  %v117_v23 = vand.u32 4294901760, %v823_v16  ;;  %v124_v24 = vand.u32 4294901760, %v825_v17  ;;  %v131_v25 = vand.u32 4294901760, %v827_v18  ;;  %v712_v46 = vpack.c.bf16 %v825_v17, %v823_v16 }
   0x7   :  { %702 = vmatprep.subr.bf16.mxu1 %v760_v0  ;;  %720 = vmatprep.subr.bf16.mxu0 %v760_v0  ;;  %v105_v27 = vsub.f32 %v33_v11, %v831_v20  ;;  %v138_v28 = vand.u32 4294901760, %v829_v19  ;;  %v715_v47 = vpack.c.bf16 %v829_v19, %v827_v18  ;;  %v563_v60 = vsub.s32 1, %v536_v53 }
   0x8   :  { %v118_v29 = vsub.f32 %v823_v16, %v117_v23  ;;  %v125_v30 = vsub.f32 %v825_v17, %v124_v24  ;;  %v132_v31 = vsub.f32 %v827_v18, %v131_v25  ;;  %527 = vperm.xlu0 %750, %v523_v21   ;;  %v724_v37 = vpack.c.bf16 %v124_v24, %v117_v23 }
   0x9   :  { %v106_v32 = vand.u32 4294901760, %v105_v27  ;;  %v139_v33 = vsub.f32 %v829_v19, %v138_v28  ;;  %543 = vperm.xlu1 %751, %v521_v26   ;;  %v727_v44 = vpack.c.bf16 %v138_v28, %v131_v25 }
   0xa   :  { %704 = vmatpush3.bf16.msra.mxu1 %v703_v22  ;;  %722 = vmatpush3.bf16.msra.mxu0 %v703_v22  ;;  %v119_v35 = vand.u32 4294901760, %v118_v29  ;;  %v126_v36 = vand.u32 4294901760, %v125_v30  ;;  %v133_v40 = vand.u32 4294901760, %v132_v31 }
   0xb   :  { %v107_v38 = vsub.f32 %v105_v27, %v106_v32  ;;  %705 = vmatprep.subr.bf16.mxu1 %v760_v0  ;;  %723 = vmatprep.subr.bf16.mxu0 %v760_v0  ;;  %v140_v41 = vand.u32 4294901760, %v139_v33 }
   0xc   :  { %v706_v39 = vpack.c.bf16 %v126_v36, %v119_v35  ;;  %548 = vperm.xlu0 %750, %v522_v34  }
   0xd   :  { %v108_v42 = vand.u32 4294901760, %v107_v38  ;;  %675 = vmatmul.mubr.f32.vlgmr.msra.gmra.mrb[0].mxu0 %v106_v32  ;;  %752 = vset.pattern.permute.xlu1 %v764_v43  ;;  %v709_v45 = vpack.c.bf16 %v140_v41, %v133_v40 }
   0xe   :  { %725 = vmatpush3.bf16.msra.mxu0 %v724_v37  ;;  %685 = vmatprep.mubr.msk.f32.mxu0 %vm761_vm1, %v762_v8 }
   0xf   :  { %642 = vmatmul.mubr.f32.vlgmr.msra.gmra.mrb[0].mxu1 %v108_v42  ;;  %726 = vmatprep.subr.bf16.mxu0 %v760_v0 }
  0x10   :  { %707 = vmatpush3.bf16.msra.mxu1 %v706_v39  ;;  %652 = vmatprep.mubr.msk.f32.mxu1 %vm761_vm1, %v762_v8 }
  0x11   :  { %708 = vmatprep.subr.bf16.mxu1 %v760_v0  ;;  %753 = vset.pattern.permute.xlu0 %v764_v43 }
  0x12   :  { %728 = vmatpush3.bf16.msra.mxu0 %v727_v44  ;;  %554 = vperm.xlu1 %752, %v523_v21  }
  0x13   :  { %729 = vmatprep.subr.bf16.mxu0 %v760_v0  ;;  %558 = vperm.xlu0 %753, %v524_v14  }
  0x14   :  { %710 = vmatpush3.bf16.msra.mxu1 %v709_v45 }
  0x15   :  { %711 = vmatprep.subr.bf16.mxu1 %v760_v0  ;;  %686 = vmatmul.mubr.f32.vlgmr.msra.gmra.mrb[0].mxu0 %v831_v20 }
  0x16   :  { %731 = vmatpush3.bf16.msra.mxu0 %v700_v15  ;;  %696 = vmatprep.mubr.msk.f32.mxu0 %vm761_vm1, %v762_v8 }
  0x17   :  { %653 = vmatmul.mubr.f32.vlgmr.msra.gmra.mrb[0].mxu1 %v831_v20  ;;  %732 = vmatprep.subr.bf16.mxu0 %v760_v0 }
  0x18   :  { %713 = vmatpush3.bf16.msra.mxu1 %v712_v46  ;;  %663 = vmatprep.mubr.msk.f32.mxu1 %vm761_vm1, %v762_v8 }
  0x19   :  { %714 = vmatprep.subr.bf16.mxu1 %v760_v0 }
  0x1a   :  { %734 = vmatpush3.bf16.msra.mxu0 %v703_v22 }
  0x1c   :  { %716 = vmatpush3.bf16.msra.mxu1 %v715_v47 }
  0x1d   :  { %697 = vmatmul.mubr.f32.vlgmr.msra.gmra.mrb[0].mxu0 %v831_v20 }
  0x1f   :  { %664 = vmatmul.mubr.f32.vlgmr.msra.gmra.mrb[0].mxu1 %v105_v27 }
  0x83   :  { %v29_v48 = vpop.permute.xlu0 %28 }
  0x84   :  { %v533_v50 = vpop.permute.xlu1 %532 }
  0x87   :  { %v528_v51 = vpop.permute.xlu0 %527 }
  0x88   :  { %v544_v62 = vpop.permute.xlu1 %543 }
  0x8b   :  { %v549_v61 = vpop.permute.xlu0 %548 }
  0x91   :  { %v555_v2 = vpop.permute.xlu1 %554 }
  0x92   :  { %v559_v3 = vpop.permute.xlu0 %558 }
  0xf0   :  { %v516_v52 = vpop.f32.mrb[0].mxu0 }
  0xf1   :  { %v698_v54 = vpop.f32.mrb[1].mxu0 }
  0xf2   :  { %v281_v55 = vpop.f32.mrb[0].mxu1 }
  0xf3   :  { %v735_v56 = vadd.f32 %v281_v55, %v29_v48  ;;  %v665_v57 = vpop.f32.mrb[1].mxu1 }
  0xf5   :  { %v736_v58 = vadd.f32 %v735_v56, %v516_v52 }
  0xf7   :  { %v520_v63 = vmax.f32 %v736_v58, 0.0 }
  0xf9   :  { %v538_v0 = vrot.slane %v520_v63, %v537_v59  ;;  %v564_v1 = vrot.slane %v520_v63, %v563_v60 }
  0xfb   :  { %v540_v4 = vmul.f32 %v538_v0, %v533_v50  ;;  %v539_v5 = vmul.f32 %v538_v0, %v528_v51  ;;  %v565_v7 = vmul.f32 %v564_v1, %v555_v2  ;;  %v566_v9 = vmul.f32 %v564_v1, %v559_v3 }
  0xfd   :  { %v551_v6 = vadd.f32 %v544_v62, %v539_v5  ;;  %v552_v8 = vadd.f32 %v549_v61, %v540_v4 }
  0xff   :  { %v567_v10 = vadd.f32 %v565_v7, %v551_v6  ;;  %v568_v11 = vadd.f32 %v566_v9, %v552_v8 }
 0x101   :  { %v570_v12 = vsel %vm569_vm2, %v567_v10, -inf  ;;  %v571_v13 = vsel %vm569_vm2, %v568_v11, -inf }
 0x102   :  { %v572_v14 = vmax.f32 %v570_v12, %v571_v13 }
 0x104   :  { %v573_v15 = vrot.slane %v572_v14, 4 }
 0x106   :  { %v574_v16 = vmax.f32 %v572_v14, %v573_v15 }
 0x108   :  { %v575_v17 = vrot.slane %v574_v16, 2 }
 0x10a   :  { %v576_v18 = vmax.f32 %v574_v16, %v575_v17 }
 0x10c   :  { %v577_v19 = vrot.slane %v576_v18, 1 }
 0x10e   :  { %v578_v20 = vmax.f32 %v576_v18, %v577_v19 }
 0x110   :  { %v579_v21 = vsub.f32 %v567_v10, %v578_v20  ;;  %v580_v22 = vsub.f32 %v568_v11, %v578_v20 }
 0x112   :  { %v581_v23 = vmul.f32 1.442695, %v579_v21  ;;  %v583_v24 = vmul.f32 1.442695, %v580_v22 }
 0x114   :  { %754 = vpow2.f32 %v581_v23 }
 0x115   :  { %756 = vpow2.f32 %v583_v24 }
 0x11e   :  { %v755_v25 = vpop.eup %754 }
 0x11f   :  { %v757_v26 = vpop.eup %756  ;;  %v585_v27 = vsel %vm569_vm2, %v755_v25, 0.0 }
 0x120   :  { %v586_v28 = vsel %vm569_vm2, %v757_v26, 0.0 }
 0x121   :  { %v587_v29 = vadd.f32 %v586_v28, %v585_v27 }
 0x123   :  { %v588_v30 = vrot.slane %v587_v29, 4 }
 0x125   :  { %v589_v31 = vadd.f32 %v588_v30, %v587_v29 }
 0x127   :  { %v590_v32 = vrot.slane %v589_v31, 2 }
 0x129   :  { %v591_v33 = vadd.f32 %v590_v32, %v589_v31 }
 0x12b   :  { %v592_v34 = vrot.slane %v591_v33, 1 }
 0x12d   :  { %v593_v35 = vadd.f32 %v592_v34, %v591_v33 }
 0x12f   :  { %758 = vrcp.f32 %v593_v35 }
 0x139   :  { %v759_v36 = vpop.eup %758 }
 0x13a   :  { %v595_v37 = vmul.f32 %v759_v36, %v755_v25  ;;  %v596_v38 = vmul.f32 %v759_v36, %v757_v26 }
 0x13c   :  { %597 = vst.msk [vmem:[%s893_s5] sm:$0xff] %vm569_vm2, %v595_v37  ;;  %598 = vst.msk [vmem:[%s893_s5 + $0x8] sm:$0xff] %vm569_vm2, %v596_v38 }

</bundles_post_ra>
